<compile_context>
chip_gen: v5e
topology: v5e:2x2
jax: 0.10.0
libtpu: 0.0.40
codegen_flags: <defaults>
</compile_context>

<pallas_src>
import functools

import jax
import jax.numpy as jnp
from jax import lax
from jax.experimental import pallas as pl
from jax.experimental.pallas import tpu as pltpu


# k-block order inside the packed weight / im2col scratch (each block C rows).
_KORDER = ("center", "up", "up_h", "down", "down_h", "left", "left_h",
           "right", "right_h", "ul", "ur", "dl", "dr")


# --------------------------------- kernel -----------------------------------

def _mpfl_kernel(x_ref, w_ref, b_ref, o_ref, xall_ref, *, H, W, C, P):
    L = x_ref.shape[1]                 # images_per_block * H * W (lane width)
    H2, W2 = H // 2, W // 2
    TC = 2 * C                         # height of one selection slab / pair
    KP = xall_ref.shape[0]             # padded contraction dim

    x = x_ref[...]                     # (C, L) f32

    # single (1, L) lane iota drives every mask (broadcast over sublanes)
    lane = lax.broadcasted_iota(jnp.int32, (1, L), 1)
    p_i = jnp.bitwise_and(lane, P - 1)          # per-image flattened position
    w_i = jnp.bitwise_and(p_i, W - 1)           # column index (W power of 2)

    m_up = p_i >= W                             # h-1 >= 0
    m_down = p_i < (H - 1) * W                  # h+1 <  H
    m_left = w_i >= 1                           # w-1 >= 0
    m_right = w_i <= W - 2                      # w+1 <  W
    # extra masks reproducing the per-chunk zero padding of branches 2/3
    e_up = ~((p_i >= H2 * W) & (p_i < (H2 + 1) * W))     # h != H/2
    e_down = ~((p_i >= (H2 - 1) * W) & (p_i < H2 * W))   # h != H/2 - 1
    e_left = w_i != W2
    e_right = w_i != W2 - 1

    def sh(off, mask):
        # shifted[l] = x[l + off] inside the same image, 0 outside (lane roll;
        # masked lanes are exactly the ones that would cross an image boundary)
        return jnp.where(mask, pltpu.roll(x, (-off) % L, 1), 0.0)

    def store_pair(idx, top, bot):
        # one lane-dense, 16-row-aligned bf16 store per slab pair
        xall_ref[idx * TC:(idx + 1) * TC, :] = (
            jnp.concatenate([top, bot], axis=0).astype(jnp.bfloat16))

    z = jnp.zeros((C, L), jnp.float32)
    up = sh(-W, m_up)
    store_pair(0, x, up)                                    # center, up
    down = sh(W, m_down)
    store_pair(1, jnp.where(e_up, up, 0.0), down)           # up_h,   down
    left = sh(-1, m_left)
    store_pair(2, jnp.where(e_down, down, 0.0), left)       # down_h, left
    rgt = sh(1, m_right)
    store_pair(3, jnp.where(e_left, left, 0.0), rgt)        # left_h, right
    store_pair(4, jnp.where(e_right, rgt, 0.0),
               sh(-W - 1, m_up & m_left))                   # right_h, ul
    store_pair(5, sh(-W + 1, m_up & m_right),
               sh(W - 1, m_down & m_left))                  # ur, dl
    store_pair(6, sh(W + 1, m_down & m_right), z)           # dr, zero pad
    for i in range(7, KP // TC):                            # remaining K pad
        store_pair(i, z, z)

    # one MXU matmul produces all four selection slabs (f32 accumulation)
    y = jnp.dot(w_ref[...], xall_ref[...], preferred_element_type=jnp.float32)
    y = y + b_ref[...]                                      # (M,1) bias bcast

    # per-lane quadrant / half selection over full 2C-row slabs
    s_top = p_i < H2 * W
    s_left = w_i < W2
    out = jnp.where(s_top,
                    jnp.where(s_left, y[0 * TC:1 * TC], y[1 * TC:2 * TC]),
                    jnp.where(s_left, y[2 * TC:3 * TC], y[3 * TC:4 * TC]))
    o_ref[...] = out.astype(o_ref.dtype)                    # single dense store


# ----------------------------- host-side packing -----------------------------

def _round_up(x, m):
    return -(-x // m) * m


def pack_mpfl_params(p, C):
    """Pack 9 conv weights into one tile-aligned (4*2C rows, 13C cols) matrix
    laid out as four selection slabs [TL; TR; BL; BR], plus an (M,1) bias."""
    Co = C // 2
    TC = 2 * C
    M_pad = _round_up(4 * TC, 16)                 # bf16 sublane tile
    K_pad = _round_up(len(_KORDER) * C, 128)      # lane-aligned contraction
    koff = {name: i * C for i, name in enumerate(_KORDER)}

    w = jnp.zeros((M_pad, K_pad), jnp.float32)
    bias = jnp.zeros((M_pad, 1), jnp.float32)

    def put(w, slab, part, kname, blk):           # blk: (Co, C)
        r0 = slab * TC + part * Co
        return w.at[r0:r0 + Co, koff[kname]:koff[kname] + C].set(blk)

    # slabs: 0=top-left, 1=top-right, 2=bottom-left, 3=bottom-right
    a_w = ("wa1", "wa2", "wa3", "wa4")
    b_w = ("wb1", "wb1", "wb2", "wb2")            # top halves -> conv_b_1
    c_w = ("wc1", "wc2", "wc1", "wc2")            # left halves -> conv_c_1
    a_b = ("ba1", "ba2", "ba3", "ba4")
    b_b = ("bb1", "bb1", "bb2", "bb2")
    c_b = ("bc1", "bc2", "bc1", "bc2")
    d_taps = {(0, 0): "ul", (0, 1): "up", (0, 2): "ur",
              (1, 0): "left", (1, 1): "center", (1, 2): "right",
              (2, 0): "dl", (2, 1): "down", (2, 2): "dr"}

    for s in range(4):
        # branch 1: quadrant 1x1 conv
        w = put(w, s, 0, "center", p[a_w[s]][:, :, 0, 0])
        # branch 2: (3,1) conv on the H-half of this slab (kh 0/1/2)
        w = put(w, s, 1, "up_h", p[b_w[s]][:, :, 0, 0])
        w = put(w, s, 1, "center", p[b_w[s]][:, :, 1, 0])
        w = put(w, s, 1, "down_h", p[b_w[s]][:, :, 2, 0])
        # branch 3: (1,3) conv on the W-half of this slab (kw 0/1/2)
        w = put(w, s, 2, "left_h", p[c_w[s]][:, :, 0, 0])
        w = put(w, s, 2, "center", p[c_w[s]][:, :, 0, 1])
        w = put(w, s, 2, "right_h", p[c_w[s]][:, :, 0, 2])
        # branch 4: full 3x3 conv (identical rows in all four slabs)
        for (kh, kw), kname in d_taps.items():
            w = put(w, s, 3, kname, p["wd"][:, :, kh, kw])
        # biases
        r = s * TC
        bias = bias.at[r + 0 * Co:r + 1 * Co, 0].set(p[a_b[s]])
        bias = bias.at[r + 1 * Co:r + 2 * Co, 0].set(p[b_b[s]])
        bias = bias.at[r + 2 * Co:r + 3 * Co, 0].set(p[c_b[s]])
        bias = bias.at[r + 3 * Co:r + 4 * Co, 0].set(p["bd"])
    return w.astype(jnp.bfloat16), bias


# --------------------------------- wrapper -----------------------------------

def mpfl_forward(x_nchw, w_packed, b_packed, *, images_per_block=None):
    """x_nchw: (N, C, H, W) f32 -> (N, 2*C, H, W), matching MPFL.forward.

    images_per_block=None folds every image into one grid step (best on
    v5e/v6e); pass N//2 on v7x to put one step on each TensorCore.
    """
    N, C, H, W = x_nchw.shape
    P = H * W
    assert C % 2 == 0 and H % 2 == 0 and W % 2 == 0
    assert (W & (W - 1)) == 0 and (P & (P - 1)) == 0, \
        "kernel uses bit-masks; W and H*W must be powers of two"
    # TODO(synk): support non power-of-two W / H*W (needs vector mod-by-constant).
    ipb = N if images_per_block is None else images_per_block
    assert N % ipb == 0
    L = ipb * P
    M_pad, K_pad = w_packed.shape
    assert K_pad % (2 * C) == 0 and K_pad >= 14 * C and M_pad >= 8 * C

    # lane-dense layout: each image is a contiguous (C, P) slab along lanes
    x_lane = jnp.transpose(x_nchw.reshape(N, C, P), (1, 0, 2)).reshape(C, N * P)

    out_flat = pl.pallas_call(
        functools.partial(_mpfl_kernel, H=H, W=W, C=C, P=P),
        out_shape=jax.ShapeDtypeStruct((2 * C, N * P), x_nchw.dtype),
        grid=(N // ipb,),
        in_specs=[pl.BlockSpec((C, L), lambda b: (0, b)),
                  pl.BlockSpec((M_pad, K_pad), lambda b: (0, 0)),
                  pl.BlockSpec((M_pad, 1), lambda b: (0, 0))],
        out_specs=pl.BlockSpec((2 * C, L), lambda b: (0, b)),
        scratch_shapes=[pltpu.VMEM((K_pad, L), jnp.bfloat16)],
        compiler_params=pltpu.CompilerParams(dimension_semantics=("parallel",)),
    )(x_lane, w_packed, b_packed)

    out = out_flat.reshape(2 * C, N, P).transpose(1, 0, 2)
    return out.reshape(N, 2 * C, H, W)


# ----------------------------- pure-JAX reference -----------------------------

def _conv_nchw(x, w, b, padding):
    y = lax.conv_general_dilated(x, w, window_strides=(1, 1), padding=padding,
                                 dimension_numbers=("NCHW", "OIHW", "NCHW"))
    return y + b.reshape(1, -1, 1, 1)


def mpfl_reference(x, p):
    N, C, H, W = x.shape
    H2, W2 = H // 2, W // 2
    q00 = _conv_nchw(x[:, :, :H2, :W2], p["wa1"], p["ba1"], "VALID")
    q01 = _conv_nchw(x[:, :, :H2, W2:], p["wa2"], p["ba2"], "VALID")
    q10 = _conv_nchw(x[:, :, H2:, :W2], p["wa3"], p["ba3"], "VALID")
    q11 = _conv_nchw(x[:, :, H2:, W2:], p["wa4"], p["ba4"], "VALID")
    y1 = jnp.concatenate([jnp.concatenate([q00, q01], axis=3),
                          jnp.concatenate([q10, q11], axis=3)], axis=2)
    y2 = jnp.concatenate(
        [_conv_nchw(x[:, :, :H2], p["wb1"], p["bb1"], ((1, 1), (0, 0))),
         _conv_nchw(x[:, :, H2:], p["wb2"], p["bb2"], ((1, 1), (0, 0)))], axis=2)
    y3 = jnp.concatenate(
        [_conv_nchw(x[:, :, :, :W2], p["wc1"], p["bc1"], ((0, 0), (1, 1))),
         _conv_nchw(x[:, :, :, W2:], p["wc2"], p["bc2"], ((0, 0), (1, 1)))], axis=3)
    y4 = _conv_nchw(x, p["wd"], p["bd"], ((1, 1), (1, 1)))
    return jnp.concatenate([y1, y2, y3, y4], axis=1)


# ----------------------------------- main ------------------------------------

def init_params(key, C):
    Co = C // 2
    ks = jax.random.split(key, 18)
    n = lambda k, shape: 0.1 * jax.random.normal(k, shape, jnp.float32)
    p = {
        "wa1": n(ks[0], (Co, C, 1, 1)), "wa2": n(ks[1], (Co, C, 1, 1)),
        "wa3": n(ks[2], (Co, C, 1, 1)), "wa4": n(ks[3], (Co, C, 1, 1)),
        "wb1": n(ks[4], (Co, C, 3, 1)), "wb2": n(ks[5], (Co, C, 3, 1)),
        "wc1": n(ks[6], (Co, C, 1, 3)), "wc2": n(ks[7], (Co, C, 1, 3)),
        "wd": n(ks[8], (Co, C, 3, 3)),
    }
    for i, name in enumerate(("ba1", "ba2", "ba3", "ba4",
                              "bb1", "bb2", "bc1", "bc2", "bd")):
        p[name] = 0.05 * jax.random.normal(ks[9 + i], (Co,), jnp.float32)
    return p


if __name__ == "__main__":
    N, C, H, W = 2, 8, 16, 16                  # PyTorch NCHW input
    key = jax.random.PRNGKey(0)
    kx, kp = jax.random.split(key)
    x = jax.random.normal(kx, (N, C, H, W), jnp.float32)
    params = init_params(kp, C)

    # pack once, OUTSIDE the jitted forward (review item: avoid per-call packing)
    w_packed, b_packed = pack_mpfl_params(params, C)       # (64,128) bf16, (64,1) f32

    mpfl = jax.jit(mpfl_forward)
    out = jax.block_until_ready(mpfl(x, w_packed, b_packed))

    ref = mpfl_reference(x, params)
    assert out.shape == (N, 2 * C, H, W)
    err = float(jnp.max(jnp.abs(out - ref)))
    assert jnp.allclose(out, ref, rtol=2e-2, atol=2e-2), err

    print("KERNEL_OK")
</pallas_src>

<mosaic_0001>
module attributes {stable_mosaic.version = 11 : i64} {
  func.func @_mpfl_kernel(%arg0: i32, %arg1: memref<8x512xf32, #tpu.memory_space<vmem>>, %arg2: memref<64x128xbf16, #tpu.memory_space<vmem>>, %arg3: memref<64x1xf32, #tpu.memory_space<vmem>>, %arg4: memref<16x512xf32, #tpu.memory_space<vmem>>, %arg5: memref<128x512xbf16, #tpu.memory_space<vmem>>) attributes {dimension_semantics = [#tpu.dimension_semantics<parallel>], iteration_bounds = array<i64: 1>, scalar_prefetch = 0 : i64, scratch_operands = 1 : i64, tpu.core_type = #tpu.core_type<tc>, window_params = [{transform_indices = @transform_0, window_bounds = array<i64: 8, 512>}, {pipeline_mode = #tpu.pipeline_mode<synchronous>, transform_indices = @transform_1, window_bounds = array<i64: 64, 128>}, {pipeline_mode = #tpu.pipeline_mode<synchronous>, transform_indices = @transform_2, window_bounds = array<i64: 64, 1>}, {transform_indices = @transform_3, window_bounds = array<i64: 16, 512>}]} {
    %c0 = arith.constant 0 : index
    %c0_0 = arith.constant 0 : index
    %0 = vector.load %arg1[%c0, %c0_0] : memref<8x512xf32, #tpu.memory_space<vmem>>, vector<8x512xf32>
    %1 = tpu.iota {dimensions = array<i32: 1>} : vector<1x512xi32>
    %c255_i32 = arith.constant 255 : i32
    %2 = vector.broadcast %c255_i32 : i32 to vector<1x512xi32>
    %3 = arith.andi %1, %2 : vector<1x512xi32>
    %c15_i32 = arith.constant 15 : i32
    %4 = vector.broadcast %c15_i32 : i32 to vector<1x512xi32>
    %5 = arith.andi %3, %4 : vector<1x512xi32>
    %c16_i32 = arith.constant 16 : i32
    %6 = vector.broadcast %c16_i32 : i32 to vector<1x512xi32>
    %7 = arith.cmpi sge, %3, %6 : vector<1x512xi32>
    %c240_i32 = arith.constant 240 : i32
    %8 = vector.broadcast %c240_i32 : i32 to vector<1x512xi32>
    %9 = arith.cmpi slt, %3, %8 : vector<1x512xi32>
    %c1_i32 = arith.constant 1 : i32
    %10 = vector.broadcast %c1_i32 : i32 to vector<1x512xi32>
    %11 = arith.cmpi sge, %5, %10 : vector<1x512xi32>
    %c14_i32 = arith.constant 14 : i32
    %12 = vector.broadcast %c14_i32 : i32 to vector<1x512xi32>
    %13 = arith.cmpi sle, %5, %12 : vector<1x512xi32>
    %c128_i32 = arith.constant 128 : i32
    %14 = vector.broadcast %c128_i32 : i32 to vector<1x512xi32>
    %15 = arith.cmpi sge, %3, %14 : vector<1x512xi32>
    %c144_i32 = arith.constant 144 : i32
    %16 = vector.broadcast %c144_i32 : i32 to vector<1x512xi32>
    %17 = arith.cmpi slt, %3, %16 : vector<1x512xi32>
    %18 = arith.andi %15, %17 : vector<1x512xi1>
    %cst = arith.constant dense<true> : vector<1x512xi1>
    %19 = arith.xori %18, %cst : vector<1x512xi1>
    %c112_i32 = arith.constant 112 : i32
    %20 = vector.broadcast %c112_i32 : i32 to vector<1x512xi32>
    %21 = arith.cmpi sge, %3, %20 : vector<1x512xi32>
    %c128_i32_1 = arith.constant 128 : i32
    %22 = vector.broadcast %c128_i32_1 : i32 to vector<1x512xi32>
    %23 = arith.cmpi slt, %3, %22 : vector<1x512xi32>
    %24 = arith.andi %21, %23 : vector<1x512xi1>
    %cst_2 = arith.constant dense<true> : vector<1x512xi1>
    %25 = arith.xori %24, %cst_2 : vector<1x512xi1>
    %c8_i32 = arith.constant 8 : i32
    %26 = vector.broadcast %c8_i32 : i32 to vector<1x512xi32>
    %27 = arith.cmpi ne, %5, %26 : vector<1x512xi32>
    %c7_i32 = arith.constant 7 : i32
    %28 = vector.broadcast %c7_i32 : i32 to vector<1x512xi32>
    %29 = arith.cmpi ne, %5, %28 : vector<1x512xi32>
    %cst_3 = arith.constant 0.000000e+00 : f32
    %30 = vector.broadcast %cst_3 : f32 to vector<8x512xf32>
    %c16_i32_4 = arith.constant 16 : i32
    %31 = tpu.dynamic_rotate %0 by %c16_i32_4 dim 1 : vector<8x512xf32>, i32 -> vector<8x512xf32>
    %cst_5 = arith.constant 0.000000e+00 : f32
    %32 = vector.shape_cast %7 : vector<1x512xi1> to vector<1x512xi1>
    %33 = vector.broadcast %32 : vector<1x512xi1> to vector<8x512xi1>
    %34 = vector.broadcast %cst_5 : f32 to vector<8x512xf32>
    %35 = arith.select %33, %31, %34 : vector<8x512xi1>, vector<8x512xf32>
    %36 = tpu.concatenate %0, %35 in 0 : vector<8x512xf32>, vector<8x512xf32> -> vector<16x512xf32>
    %37 = arith.truncf %36 : vector<16x512xf32> to vector<16x512xbf16>
    %c0_6 = arith.constant 0 : index
    %c0_7 = arith.constant 0 : index
    %38 = vector.load %arg5[%c0_6, %c0_7] : memref<128x512xbf16, #tpu.memory_space<vmem>>, vector<16x512xbf16>
    tpu.vector_store %arg5[%c0_6, %c0_7], %37 {strides = array<i32>} : memref<128x512xbf16, #tpu.memory_space<vmem>>, vector<16x512xbf16>,
    %c496_i32 = arith.constant 496 : i32
    %39 = tpu.dynamic_rotate %0 by %c496_i32 dim 1 : vector<8x512xf32>, i32 -> vector<8x512xf32>
    %cst_8 = arith.constant 0.000000e+00 : f32
    %40 = vector.shape_cast %9 : vector<1x512xi1> to vector<1x512xi1>
    %41 = vector.broadcast %40 : vector<1x512xi1> to vector<8x512xi1>
    %42 = vector.broadcast %cst_8 : f32 to vector<8x512xf32>
    %43 = arith.select %41, %39, %42 : vector<8x512xi1>, vector<8x512xf32>
    %cst_9 = arith.constant 0.000000e+00 : f32
    %44 = vector.shape_cast %19 : vector<1x512xi1> to vector<1x512xi1>
    %45 = vector.broadcast %44 : vector<1x512xi1> to vector<8x512xi1>
    %46 = vector.broadcast %cst_9 : f32 to vector<8x512xf32>
    %47 = arith.select %45, %35, %46 : vector<8x512xi1>, vector<8x512xf32>
    %48 = tpu.concatenate %47, %43 in 0 : vector<8x512xf32>, vector<8x512xf32> -> vector<16x512xf32>
    %49 = arith.truncf %48 : vector<16x512xf32> to vector<16x512xbf16>
    %c16 = arith.constant 16 : index
    %c0_10 = arith.constant 0 : index
    %50 = vector.load %arg5[%c16, %c0_10] : memref<128x512xbf16, #tpu.memory_space<vmem>>, vector<16x512xbf16>
    tpu.vector_store %arg5[%c16, %c0_10], %49 {strides = array<i32>} : memref<128x512xbf16, #tpu.memory_space<vmem>>, vector<16x512xbf16>,
    %c1_i32_11 = arith.constant 1 : i32
    %51 = tpu.dynamic_rotate %0 by %c1_i32_11 dim 1 : vector<8x512xf32>, i32 -> vector<8x512xf32>
    %cst_12 = arith.constant 0.000000e+00 : f32
    %52 = vector.shape_cast %11 : vector<1x512xi1> to vector<1x512xi1>
    %53 = vector.broadcast %52 : vector<1x512xi1> to vector<8x512xi1>
    %54 = vector.broadcast %cst_12 : f32 to vector<8x512xf32>
    %55 = arith.select %53, %51, %54 : vector<8x512xi1>, vector<8x512xf32>
    %cst_13 = arith.constant 0.000000e+00 : f32
    %56 = vector.shape_cast %25 : vector<1x512xi1> to vector<1x512xi1>
    %57 = vector.broadcast %56 : vector<1x512xi1> to vector<8x512xi1>
    %58 = vector.broadcast %cst_13 : f32 to vector<8x512xf32>
    %59 = arith.select %57, %43, %58 : vector<8x512xi1>, vector<8x512xf32>
    %60 = tpu.concatenate %59, %55 in 0 : vector<8x512xf32>, vector<8x512xf32> -> vector<16x512xf32>
    %61 = arith.truncf %60 : vector<16x512xf32> to vector<16x512xbf16>
    %c32 = arith.constant 32 : index
    %c0_14 = arith.constant 0 : index
    %62 = vector.load %arg5[%c32, %c0_14] : memref<128x512xbf16, #tpu.memory_space<vmem>>, vector<16x512xbf16>
    tpu.vector_store %arg5[%c32, %c0_14], %61 {strides = array<i32>} : memref<128x512xbf16, #tpu.memory_space<vmem>>, vector<16x512xbf16>,
    %c511_i32 = arith.constant 511 : i32
    %63 = tpu.dynamic_rotate %0 by %c511_i32 dim 1 : vector<8x512xf32>, i32 -> vector<8x512xf32>
    %cst_15 = arith.constant 0.000000e+00 : f32
    %64 = vector.shape_cast %13 : vector<1x512xi1> to vector<1x512xi1>
    %65 = vector.broadcast %64 : vector<1x512xi1> to vector<8x512xi1>
    %66 = vector.broadcast %cst_15 : f32 to vector<8x512xf32>
    %67 = arith.select %65, %63, %66 : vector<8x512xi1>, vector<8x512xf32>
    %cst_16 = arith.constant 0.000000e+00 : f32
    %68 = vector.shape_cast %27 : vector<1x512xi1> to vector<1x512xi1>
    %69 = vector.broadcast %68 : vector<1x512xi1> to vector<8x512xi1>
    %70 = vector.broadcast %cst_16 : f32 to vector<8x512xf32>
    %71 = arith.select %69, %55, %70 : vector<8x512xi1>, vector<8x512xf32>
    %72 = tpu.concatenate %71, %67 in 0 : vector<8x512xf32>, vector<8x512xf32> -> vector<16x512xf32>
    %73 = arith.truncf %72 : vector<16x512xf32> to vector<16x512xbf16>
    %c48 = arith.constant 48 : index
    %c0_17 = arith.constant 0 : index
    %74 = vector.load %arg5[%c48, %c0_17] : memref<128x512xbf16, #tpu.memory_space<vmem>>, vector<16x512xbf16>
    tpu.vector_store %arg5[%c48, %c0_17], %73 {strides = array<i32>} : memref<128x512xbf16, #tpu.memory_space<vmem>>, vector<16x512xbf16>,
    %cst_18 = arith.constant 0.000000e+00 : f32
    %75 = vector.shape_cast %29 : vector<1x512xi1> to vector<1x512xi1>
    %76 = vector.broadcast %75 : vector<1x512xi1> to vector<8x512xi1>
    %77 = vector.broadcast %cst_18 : f32 to vector<8x512xf32>
    %78 = arith.select %76, %67, %77 : vector<8x512xi1>, vector<8x512xf32>
    %79 = arith.andi %7, %11 : vector<1x512xi1>
    %c17_i32 = arith.constant 17 : i32
    %80 = tpu.dynamic_rotate %0 by %c17_i32 dim 1 : vector<8x512xf32>, i32 -> vector<8x512xf32>
    %cst_19 = arith.constant 0.000000e+00 : f32
    %81 = vector.shape_cast %79 : vector<1x512xi1> to vector<1x512xi1>
    %82 = vector.broadcast %81 : vector<1x512xi1> to vector<8x512xi1>
    %83 = vector.broadcast %cst_19 : f32 to vector<8x512xf32>
    %84 = arith.select %82, %80, %83 : vector<8x512xi1>, vector<8x512xf32>
    %85 = tpu.concatenate %78, %84 in 0 : vector<8x512xf32>, vector<8x512xf32> -> vector<16x512xf32>
    %86 = arith.truncf %85 : vector<16x512xf32> to vector<16x512xbf16>
    %c64 = arith.constant 64 : index
    %c0_20 = arith.constant 0 : index
    %87 = vector.load %arg5[%c64, %c0_20] : memref<128x512xbf16, #tpu.memory_space<vmem>>, vector<16x512xbf16>
    tpu.vector_store %arg5[%c64, %c0_20], %86 {strides = array<i32>} : memref<128x512xbf16, #tpu.memory_space<vmem>>, vector<16x512xbf16>,
    %88 = arith.andi %7, %13 : vector<1x512xi1>
    %c15_i32_21 = arith.constant 15 : i32
    %89 = tpu.dynamic_rotate %0 by %c15_i32_21 dim 1 : vector<8x512xf32>, i32 -> vector<8x512xf32>
    %cst_22 = arith.constant 0.000000e+00 : f32
    %90 = vector.shape_cast %88 : vector<1x512xi1> to vector<1x512xi1>
    %91 = vector.broadcast %90 : vector<1x512xi1> to vector<8x512xi1>
    %92 = vector.broadcast %cst_22 : f32 to vector<8x512xf32>
    %93 = arith.select %91, %89, %92 : vector<8x512xi1>, vector<8x512xf32>
    %94 = arith.andi %9, %11 : vector<1x512xi1>
    %c497_i32 = arith.constant 497 : i32
    %95 = tpu.dynamic_rotate %0 by %c497_i32 dim 1 : vector<8x512xf32>, i32 -> vector<8x512xf32>
    %cst_23 = arith.constant 0.000000e+00 : f32
    %96 = vector.shape_cast %94 : vector<1x512xi1> to vector<1x512xi1>
    %97 = vector.broadcast %96 : vector<1x512xi1> to vector<8x512xi1>
    %98 = vector.broadcast %cst_23 : f32 to vector<8x512xf32>
    %99 = arith.select %97, %95, %98 : vector<8x512xi1>, vector<8x512xf32>
    %100 = tpu.concatenate %93, %99 in 0 : vector<8x512xf32>, vector<8x512xf32> -> vector<16x512xf32>
    %101 = arith.truncf %100 : vector<16x512xf32> to vector<16x512xbf16>
    %c80 = arith.constant 80 : index
    %c0_24 = arith.constant 0 : index
    %102 = vector.load %arg5[%c80, %c0_24] : memref<128x512xbf16, #tpu.memory_space<vmem>>, vector<16x512xbf16>
    tpu.vector_store %arg5[%c80, %c0_24], %101 {strides = array<i32>} : memref<128x512xbf16, #tpu.memory_space<vmem>>, vector<16x512xbf16>,
    %103 = arith.andi %9, %13 : vector<1x512xi1>
    %c495_i32 = arith.constant 495 : i32
    %104 = tpu.dynamic_rotate %0 by %c495_i32 dim 1 : vector<8x512xf32>, i32 -> vector<8x512xf32>
    %cst_25 = arith.constant 0.000000e+00 : f32
    %105 = vector.shape_cast %103 : vector<1x512xi1> to vector<1x512xi1>
    %106 = vector.broadcast %105 : vector<1x512xi1> to vector<8x512xi1>
    %107 = vector.broadcast %cst_25 : f32 to vector<8x512xf32>
    %108 = arith.select %106, %104, %107 : vector<8x512xi1>, vector<8x512xf32>
    %109 = tpu.concatenate %108, %30 in 0 : vector<8x512xf32>, vector<8x512xf32> -> vector<16x512xf32>
    %110 = arith.truncf %109 : vector<16x512xf32> to vector<16x512xbf16>
    %c96 = arith.constant 96 : index
    %c0_26 = arith.constant 0 : index
    %111 = vector.load %arg5[%c96, %c0_26] : memref<128x512xbf16, #tpu.memory_space<vmem>>, vector<16x512xbf16>
    tpu.vector_store %arg5[%c96, %c0_26], %110 {strides = array<i32>} : memref<128x512xbf16, #tpu.memory_space<vmem>>, vector<16x512xbf16>,
    %112 = tpu.concatenate %30, %30 in 0 : vector<8x512xf32>, vector<8x512xf32> -> vector<16x512xf32>
    %113 = arith.truncf %112 : vector<16x512xf32> to vector<16x512xbf16>
    %c112 = arith.constant 112 : index
    %c0_27 = arith.constant 0 : index
    %114 = vector.load %arg5[%c112, %c0_27] : memref<128x512xbf16, #tpu.memory_space<vmem>>, vector<16x512xbf16>
    tpu.vector_store %arg5[%c112, %c0_27], %113 {strides = array<i32>} : memref<128x512xbf16, #tpu.memory_space<vmem>>, vector<16x512xbf16>,
    %c0_28 = arith.constant 0 : index
    %c0_29 = arith.constant 0 : index
    %115 = vector.load %arg2[%c0_28, %c0_29] : memref<64x128xbf16, #tpu.memory_space<vmem>>, vector<64x128xbf16>
    %c0_30 = arith.constant 0 : index
    %c0_31 = arith.constant 0 : index
    %116 = vector.load %arg5[%c0_30, %c0_31] : memref<128x512xbf16, #tpu.memory_space<vmem>>, vector<128x512xbf16>
    %cst_32 = arith.constant dense<0.000000e+00> : vector<64x512xf32>
    %117 = tpu.matmul %115, %116, %cst_32 {dimension_numbers = #tpu.dot_dimension_numbers<[1], [0], [0], [1], [0, 0, 1, 1], [], []>} : vector<64x128xbf16>, vector<128x512xbf16>, vector<64x512xf32> -> vector<64x512xf32>
    %c0_33 = arith.constant 0 : index
    %c0_34 = arith.constant 0 : index
    %118 = vector.load %arg3[%c0_33, %c0_34] : memref<64x1xf32, #tpu.memory_space<vmem>>, vector<64x1xf32>
    %119 = vector.broadcast %118 : vector<64x1xf32> to vector<64x512xf32>
    %120 = arith.addf %117, %119 : vector<64x512xf32>
    %c128_i32_35 = arith.constant 128 : i32
    %121 = vector.broadcast %c128_i32_35 : i32 to vector<1x512xi32>
    %122 = arith.cmpi slt, %3, %121 : vector<1x512xi32>
    %c8_i32_36 = arith.constant 8 : i32
    %123 = vector.broadcast %c8_i32_36 : i32 to vector<1x512xi32>
    %124 = arith.cmpi slt, %5, %123 : vector<1x512xi32>
    %125 = vector.extract_strided_slice %120 {offsets = [0, 0], sizes = [16, 512], strides = [1, 1]} : vector<64x512xf32> to vector<16x512xf32>
    %126 = vector.extract_strided_slice %120 {offsets = [16, 0], sizes = [16, 512], strides = [1, 1]} : vector<64x512xf32> to vector<16x512xf32>
    %127 = vector.shape_cast %124 : vector<1x512xi1> to vector<1x512xi1>
    %128 = vector.broadcast %127 : vector<1x512xi1> to vector<16x512xi1>
    %129 = arith.select %128, %125, %126 : vector<16x512xi1>, vector<16x512xf32>
    %130 = vector.extract_strided_slice %120 {offsets = [32, 0], sizes = [16, 512], strides = [1, 1]} : vector<64x512xf32> to vector<16x512xf32>
    %131 = vector.extract_strided_slice %120 {offsets = [48, 0], sizes = [16, 512], strides = [1, 1]} : vector<64x512xf32> to vector<16x512xf32>
    %132 = vector.shape_cast %124 : vector<1x512xi1> to vector<1x512xi1>
    %133 = vector.broadcast %132 : vector<1x512xi1> to vector<16x512xi1>
    %134 = arith.select %133, %130, %131 : vector<16x512xi1>, vector<16x512xf32>
    %135 = vector.shape_cast %122 : vector<1x512xi1> to vector<1x512xi1>
    %136 = vector.broadcast %135 : vector<1x512xi1> to vector<16x512xi1>
    %137 = arith.select %136, %129, %134 : vector<16x512xi1>, vector<16x512xf32>
    %c0_37 = arith.constant 0 : index
    %c0_38 = arith.constant 0 : index
    %138 = vector.load %arg4[%c0_37, %c0_38] : memref<16x512xf32, #tpu.memory_space<vmem>>, vector<16x512xf32>
    tpu.vector_store %arg4[%c0_37, %c0_38], %137 {strides = array<i32>} : memref<16x512xf32, #tpu.memory_space<vmem>>, vector<16x512xf32>,
    return
  }
  func.func @transform_0(%arg0: i32) -> (i32, i32) {
    %c0_i32 = arith.constant 0 : i32
    %c0_i32_0 = arith.constant 0 : i32
    return %c0_i32, %arg0 : i32, i32
  }
  func.func @transform_1(%arg0: i32) -> (i32, i32) {
    %c0_i32 = arith.constant 0 : i32
    %c0_i32_0 = arith.constant 0 : i32
    %c0_i32_1 = arith.constant 0 : i32
    return %c0_i32, %c0_i32_0 : i32, i32
  }
  func.func @transform_2(%arg0: i32) -> (i32, i32) {
    %c0_i32 = arith.constant 0 : i32
    %c0_i32_0 = arith.constant 0 : i32
    %c0_i32_1 = arith.constant 0 : i32
    return %c0_i32, %c0_i32_0 : i32, i32
  }
  func.func @transform_3(%arg0: i32) -> (i32, i32) {
    %c0_i32 = arith.constant 0 : i32
    %c0_i32_0 = arith.constant 0 : i32
    return %c0_i32, %arg0 : i32, i32
  }
}

</mosaic_0001>

<bundles_post_ra>
// kernel: mpfl_forward.1
= control target key start
LH: loop header
LB: loop body
LE: loop exit
PB: predicated region body
PF: predicated region fallthrough
CT: control target
= control target key end

     0   :  { %s1118_s18 = smov 15   ;;  %s1119_s19 = smov 111   ;;  %v18_v8 = vlaneseq  ;;  %v1126_v21 = vmov 0.0|0.0   ;;  %s1581_s0 = inlined_call_operand.vmem [shape: f32[8,512], index: 0, kind: input, shape index: {}]   ;;  %s1582_s2 = inlined_call_operand.vmem [shape: f32[64,1], index: 2, kind: input, shape index: {}]   ;;  %s1583_s1 = inlined_call_operand.vmem [shape: bf16[64,128], index: 1, kind: input, shape index: {}]   ;;  %s1584_s3 = inlined_call_operand.vmem [shape: f32[16,512], index: 3, kind: output, shape index: {}]  }
   0x1   :  { %v1152_v0 = vld [vmem:[%s1581_s0 + $0x8] sm:$0xff]  ;;  %v1157_v1 = vld [vmem:[%s1581_s0 + $0x10] sm:$0xff]  ;;  %v1162_v2 = vld [vmem:[%s1581_s0] sm:$0xff]  ;;  %s1120_s22 = smov 113   ;;  %s1121_s23 = smov 127   ;;  %406 = vst [vmem:[#allocation2 + $0xe0] sm:$0xff] %v1126_v21 }
   0x2   :  { %v1055_v3 = vpack.i.bf16 %v1157_v1, %v1152_v0  ;;  %v1045_v4 = vpack.i.bf16 %v1157_v1, %v1162_v2  ;;  %v1171_v5 = vld [vmem:[%s1581_s0 + $0x18] sm:$0xff]  ;;  %s1122_s24 = smov 17   ;;  %s1123_s25 = smov 1   ;;  %v1181_v9 = vand.u32 127, %v18_v8  ;;  %408 = vst [vmem:[#allocation2 + $0xf0] sm:$0xff] %v1126_v21 }
   0x3   :  { %v1060_v6 = vpack.i.bf16 %v1162_v2, %v1171_v5  ;;  %v1050_v7 = vpack.i.bf16 %v1152_v0, %v1171_v5  ;;  %s1124_s0 = smov 112   ;;  %s1125_s26 = smov 16   ;;  %404 = vst [vmem:[#allocation2 + $0xd0] sm:$0xff] %v1126_v21 }
   0x4   :  { %1056 = vrot.lane.b32.xlu1 %v1055_v3, %s1118_s18  ;;  %1046 = vrot.lane.b32.xlu0 %v1045_v4, %s1119_s19  ;;  %v20_v10 = vadd.s32 128, %v1181_v9  ;;  %v22_v11 = vadd.s32 384, %v1181_v9  ;;  %v21_v14 = vadd.s32 256, %v1181_v9  ;;  %v1191_v16 = vand.u32 255, %v1181_v9  ;;  %405 = vst [vmem:[#allocation2 + $0xd8] sm:$0xff] %v1126_v21 }
   0x5   :  { %1066 = vrot.lane.b32.xlu2 %v1045_v4, %s1120_s22  ;;  %vm345_vm5 = vcmp.lt.s32.totalorder %v1181_v9, 113  ;;  %407 = vst [vmem:[#allocation2 + $0xe8] sm:$0xff] %v1126_v21  ;;  %vm316_vm11 = vcmp.lt.s32.totalorder %v1181_v9, 15 }
   0x6   :  { %v1185_v12 = vand.u32 255, %v20_v10  ;;  %v1187_v13 = vand.u32 255, %v22_v11  ;;  %v1199_v19 = vand.u32 255, %v21_v14  ;;  %v1202_v20 = vand.u32 15, %v1191_v16  ;;  %409 = vst [vmem:[#allocation2 + $0xf8] sm:$0xff] %v1126_v21 }
   0x7   :  { %vm1588_vm12 = vcmp.ge.s32.totalorder %v1191_v16, 16 }
   0x8   :  { %v1194_v17 = vand.u32 15, %v1185_v12  ;;  %v1197_v18 = vand.u32 15, %v1187_v13  ;;  %vm1589_vm0 = vcmp.lt.s32.totalorder %v1185_v12, 240  ;;  %vm1591_vm2 = vcmp.lt.s32.totalorder %v1187_v13, 240  ;;  %v984_v37 = vld [vmem:[#allocation2 + $0xe0] sm:$0xf] }
   0x9   :  { %v1209_v24 = vand.u32 15, %v1199_v19  ;;  %vm1587_vm6 = vcmp.ge.s32.totalorder %v1202_v20, 1  ;;  %v1032_v40 = vld [vmem:[#allocation2 + $0xec] sm:$0xf0]  ;;  %v1030_v41 = vld [vmem:[#allocation2 + $0xe4] sm:$0xf] }
   0xa   :  { %vm1585_vm1 = vcmp.ge.s32.totalorder %v1194_v17, 1  ;;  %vm1586_vm3 = vcmp.ge.s32.totalorder %v1197_v18, 1  ;;  %v986_v42 = vld [vmem:[#allocation2 + $0xf0] sm:$0xf0]  ;;  %v985_v43 = vor.u32 %v1032_v40, %v984_v37  ;;  %vm1590_vm9 = vcmp.ge.s32.totalorder %v1199_v19, 16 }
   0xb   :  { %vm1215_vm4 = vmand %vm1589_vm0, %vm1585_vm1  ;;  %vm41_vm7 = vcmp.ge.s32.totalorder %v1209_v24, 1  ;;  %v989_v44 = vor.u32 %v1030_v41, %v986_v42  ;;  %vm45_vm10 = vcmp.le.s32.totalorder %v1209_v24, 14  ;;  %vm43_vm13 = vcmp.le.s32.totalorder %v1202_v20, 14 }
   0xc   :  { %1061 = vrot.lane.b32.xlu1 %v1060_v6, %s1118_s18  ;;  %1051 = vrot.lane.b32.xlu0 %v1050_v7, %s1119_s19  ;;  %vm336_vm8 = vmand %vm1591_vm2, %vm1586_vm3  ;;  %v992_v45 = vld [vmem:[#allocation2 + $0xe8] sm:$0xf]  ;;  %v1031_v46 = vld [vmem:[#allocation2 + $0xec] sm:$0xf]  ;;  %vm44_vm14 = vcmp.le.s32.totalorder %v1194_v17, 14  ;;  %vm85_vm1 = vcmp.ne.s32.totalorder %v1209_v24, 7 }
   0xd   :  { %1071 = vrot.lane.b32.xlu2 %v1050_v7, %s1120_s22  ;;  %682 = vmatpush.bf16.msra.mxu0 %v985_v43  ;;  %v1033_v47 = vld [vmem:[#allocation2 + $0xf4] sm:$0xf0]  ;;  %v994_v48 = vld [vmem:[#allocation2 + $0xf8] sm:$0xf0]  ;;  %vm1244_vm15 = vmand %vm1590_vm9, %vm45_vm10 }
   0xe   :  { %711 = vmatpush.bf16.msra.mxu1 %v989_v44  ;;  %v993_v49 = vor.u32 %v1033_v47, %v992_v45  ;;  %v997_v50 = vor.u32 %v1031_v46, %v994_v48  ;;  %vm1262_vm3 = vmand %vm1588_vm12, %vm43_vm13  ;;  %vm84_vm12 = vcmp.ne.s32.totalorder %v1194_v17, 7  ;;  %v113_v47 = vpack.c.bf16 %v1171_v5, %v1157_v1 }
   0xf   :  { %v112_v1 = vpack.c.bf16 %v1152_v0, %v1162_v2 }
  0x10   :  { %740 = vmatpush.bf16.msra.mxu2 %v993_v49  ;;  %769 = vmatpush.bf16.msra.mxu3 %v997_v50  ;;  %117 = vst [vmem:[#allocation2 + $0x8] sm:$0xff] %v113_v47 }
  0x11   :  { %116 = vst [vmem:[#allocation2] sm:$0xff] %v112_v1 }
  0x14   :  { %1081 = vrot.lane.b32.xlu1 %v1050_v7, %s1121_s23  ;;  %1076 = vrot.lane.b32.xlu0 %v1045_v4, %s1121_s23 }
  0x15   :  { %1086 = vrot.lane.b32.xlu2 %v1055_v3, %s1122_s24 }
  0x1c   :  { %1096 = vrot.lane.b32.xlu1 %v1055_v3, %s1123_s25  ;;  %1091 = vrot.lane.b32.xlu0 %v1060_v6, %s1122_s24 }
  0x1d   :  { %1101 = vrot.lane.b32.xlu2 %v1060_v6, %s1123_s25 }
  0x24   :  { %126 = vrot.lane.b32.xlu1 %v1171_v5, %s1124_s0  ;;  %1106 = vrot.lane.b32.xlu0 %v1045_v4, %s1124_s0 }
  0x25   :  { %1111 = vrot.lane.b32.xlu2 %v1055_v3, %s1125_s26 }
  0x2c   :  { %122 = vrot.lane.b32.xlu1 %v1152_v0, %s1124_s0  ;;  %93 = vrot.lane.b32.xlu0 %v1171_v5, %s1125_s26 }
  0x2d   :  { %87 = vrot.lane.b32.xlu2 %v1162_v2, %s1125_s26 }
  0x5f   :  { %v1067_v15 = vpop.permute.xlu2 %1066 }
  0x60   :  { %v1069_v22 = vunpack.i.h.bf16 %v1067_v15  ;;  %v1068_v23 = vunpack.i.l.bf16 %v1067_v15 }
  0x67   :  { %v1072_v26 = vpop.permute.xlu2 %1071 }
  0x68   :  { %v1074_v27 = vunpack.i.h.bf16 %v1072_v26  ;;  %v1073_v28 = vunpack.i.l.bf16 %v1072_v26 }
  0x6a   :  { %v346_v29 = vsel %vm345_vm5, %v1069_v22, %v1073_v28  ;;  %v347_v30 = vsel %vm345_vm5, %v1074_v27, %v1069_v22  ;;  %v348_v31 = vsel %vm345_vm5, %v1068_v23, %v1074_v27  ;;  %v349_v32 = vsel %vm345_vm5, %v1073_v28, %v1068_v23 }
  0x6b   :  { %v358_v33 = vsel %vm1587_vm6, %v348_v31, 0.0  ;;  %v359_v34 = vsel %vm1215_vm4, %v347_v30, 0.0  ;;  %v360_v35 = vsel %vm41_vm7, %v346_v29, 0.0  ;;  %v361_v36 = vsel %vm336_vm8, %v349_v32, 0.0  ;;  %vm1272_vm6 = vmand %vm1589_vm0, %vm44_vm14 }
  0x6c   :  { %v364_v38 = vpack.c.bf16 %v359_v34, %v358_v33  ;;  %v365_v39 = vpack.c.bf16 %v361_v36, %v360_v35  ;;  %vm46_vm4 = vcmp.le.s32.totalorder %v1197_v18, 14  ;;  %vm382_vm5 = vcmp.lt.s32.totalorder %v1181_v9, 111 }
  0x6d   :  { %vm279_vm8 = vcmp.lt.s32.totalorder %v1181_v9, 17  ;;  %vm83_vm0 = vcmp.ne.s32.totalorder %v1202_v20, 7 }
  0x6e   :  { %368 = vst [vmem:[#allocation2 + $0xb0] sm:$0xff] %v364_v38 }
  0x6f   :  { %369 = vst [vmem:[#allocation2 + $0xb8] sm:$0xff] %v365_v39  ;;  %v1232_v51 = vpop.permute.xlu2 %1086 }
  0x70   :  { %v1089_v62 = vunpack.i.h.bf16 %v1232_v51  ;;  %v1088_v63 = vunpack.i.l.bf16 %v1232_v51 }
  0x72   :  { %v1331_v43 = vsel %vm279_vm8, %v1088_v63, %v1089_v62 }
  0x75   :  { %v1376_v14 = vld [vmem:[#allocation2 + $0xac] sm:$0xf0] }
  0x76   :  { %v1057_v52 = vpop.permute.xlu1 %1056  ;;  %v1047_v53 = vpop.permute.xlu0 %1046 }
  0x77   :  { %v1059_v54 = vunpack.i.h.bf16 %v1057_v52  ;;  %v1058_v55 = vunpack.i.l.bf16 %v1057_v52  ;;  %v1253_v58 = vpop.permute.xlu2 %1101  ;;  %v1049_v59 = vunpack.i.h.bf16 %v1047_v53  ;;  %v1048_v11 = vunpack.i.l.bf16 %v1047_v53 }
  0x78   :  { %v1104_v15 = vunpack.i.h.bf16 %v1253_v58  ;;  %v1103_v21 = vunpack.i.l.bf16 %v1253_v58 }
  0x79   :  { %v318_v57 = vsel %vm316_vm11, %v1058_v55, %v1059_v54 }
  0x7a   :  { %v331_v10 = vsel %vm1244_vm15, %v318_v57, 0.0  ;;  %vm1290_vm15 = vmand %vm1591_vm2, %vm46_vm4  ;;  %vm82_vm2 = vcmp.ne.s32.totalorder %v1197_v18, 8 }
  0x7e   :  { %v1062_v60 = vpop.permute.xlu1 %1061  ;;  %v1052_v61 = vpop.permute.xlu0 %1051 }
  0x7f   :  { %v1064_v4 = vunpack.i.h.bf16 %v1062_v60  ;;  %v1063_v6 = vunpack.i.l.bf16 %v1062_v60  ;;  %v1054_v7 = vunpack.i.h.bf16 %v1052_v61  ;;  %v1053_v8 = vunpack.i.l.bf16 %v1052_v61 }
  0x81   :  { %v319_v22 = vsel %vm316_vm11, %v1064_v4, %v1058_v55  ;;  %v317_v23 = vsel %vm316_vm11, %v1059_v54, %v1063_v6  ;;  %v320_v25 = vsel %vm316_vm11, %v1063_v6, %v1064_v4  ;;  %v383_v27 = vsel %vm382_vm5, %v1049_v59, %v1053_v8 }
  0x82   :  { %v330_v28 = vsel %vm44_vm14, %v319_v22, 0.0  ;;  %v329_v29 = vsel %vm1262_vm3, %v320_v25, 0.0  ;;  %v332_v30 = vsel %vm46_vm4, %v317_v23, 0.0  ;;  %v384_v31 = vsel %vm382_vm5, %v1054_v7, %v1049_v59  ;;  %vm1321_vm3 = vmand %vm1590_vm9, %vm41_vm7  ;;  %v1378_v22 = vld [vmem:[#allocation2 + $0xb0] sm:$0xf0] }
  0x83   :  { %v362_v32 = vpack.c.bf16 %v330_v28, %v329_v29  ;;  %v363_v33 = vpack.c.bf16 %v332_v30, %v331_v10  ;;  %v385_v34 = vsel %vm382_vm5, %v1048_v11, %v1054_v7  ;;  %v386_v35 = vsel %vm382_vm5, %v1053_v8, %v1048_v11  ;;  %v1028_v7 = vld [vmem:[#allocation2 + $0xcc] sm:$0xf0]  ;;  %v970_v8 = vld [vmem:[#allocation2 + $0xd0] sm:$0xf0]  ;;  %v1029_v10 = vld [vmem:[#allocation2 + $0xd4] sm:$0xf0] }
  0x84   :  { %v395_v36 = vsel %vm43_vm13, %v385_v34, 0.0  ;;  %v396_v37 = vsel %vm1272_vm6, %v384_v31, 0.0  ;;  %v397_v38 = vsel %vm45_vm10, %v383_v27, 0.0  ;;  %v398_v39 = vsel %vm1290_vm15, %v386_v35, 0.0  ;;  %v978_v11 = vld [vmem:[#allocation2 + $0xd8] sm:$0xf0] }
  0x85   :  { %366 = vst [vmem:[#allocation2 + $0xa0] sm:$0xff] %v362_v32  ;;  %v399_v40 = vpack.c.bf16 %v396_v37, %v395_v36  ;;  %v400_v41 = vpack.c.bf16 %v398_v39, %v397_v38  ;;  %vm1604_vm6 = vcmp.lt.s32.totalorder %v1181_v9, 1  ;;  %vm86_vm11 = vcmp.ne.s32.totalorder %v1197_v18, 7  ;;  %v1380_v23 = vld [vmem:[#allocation2 + $0xb4] sm:$0xf0] }
  0x86   :  { %v177_v44 = vsel %vm1604_vm6, %v1103_v21, %v1104_v15  ;;  %367 = vst [vmem:[#allocation2 + $0xa8] sm:$0xff] %v363_v33  ;;  %v1082_v45 = vpop.permute.xlu1 %1081  ;;  %vm218_vm5 = vcmp.lt.s32.totalorder %v1181_v9, 127  ;;  %v1077_v46 = vpop.permute.xlu0 %1076  ;;  %vm79_vm15 = vcmp.ne.s32.totalorder %v1202_v20, 8  ;;  %v294_v53 = vsel %vm1321_vm3, %v1331_v43, 0.0 }
  0x87   :  { %402 = vst [vmem:[#allocation2 + $0xc0] sm:$0xff] %v399_v40  ;;  %v1084_v48 = vunpack.i.h.bf16 %v1082_v45  ;;  %v1083_v49 = vunpack.i.l.bf16 %v1082_v45  ;;  %v1079_v50 = vunpack.i.h.bf16 %v1077_v46  ;;  %v1078_v52 = vunpack.i.l.bf16 %v1077_v46  ;;  %v1389_v33 = vpop.permute.xlu2 %1111 }
  0x88   :  { %403 = vst [vmem:[#allocation2 + $0xc8] sm:$0xff] %v400_v41  ;;  %vm1605_vm6 = vcmp.ge.s32.totalorder %v1202_v20, 1  ;;  %vm80_vm9 = vcmp.ne.s32.totalorder %v1194_v17, 8  ;;  %vm52_vm3 = vcmp.lt.s32.totalorder %v1185_v12, 144 }
  0x89   :  { %v1349_v54 = vsel %vm1605_vm6, %v177_v44, 0.0  ;;  %v219_v5 = vsel %vm218_vm5, %v1079_v50, %v1083_v49  ;;  %v220_v55 = vsel %vm218_vm5, %v1084_v48, %v1079_v50  ;;  %v221_v56 = vsel %vm218_vm5, %v1078_v52, %v1084_v48 }
  0x8a   :  { %v222_v57 = vsel %vm218_vm5, %v1083_v49, %v1078_v52  ;;  %vm81_vm6 = vcmp.ne.s32.totalorder %v1209_v24, 8  ;;  %v232_v59 = vsel %vm44_vm14, %v220_v55, 0.0  ;;  %v233_v0 = vsel %vm45_vm10, %v219_v5, 0.0 }
  0x8b   :  { %v231_v2 = vsel %vm43_vm13, %v221_v56, 0.0  ;;  %v234_v60 = vsel %vm46_vm4, %v222_v57, 0.0  ;;  %v264_v61 = vsel %vm84_vm12, %v232_v59, 0.0  ;;  %v265_v3 = vsel %vm85_vm1, %v233_v0, 0.0 }
  0x8c   :  { %v249_v4 = vpack.c.bf16 %v232_v59, %v231_v2  ;;  %v250_v6 = vpack.c.bf16 %v234_v60, %v233_v0  ;;  %v263_v25 = vsel %vm83_vm0, %v231_v2, 0.0  ;;  %v266_v26 = vsel %vm86_vm11, %v234_v60, 0.0  ;;  %v952_v27 = vld [vmem:[#allocation2 + $0xa0] sm:$0xf]  ;;  %v1022_v28 = vld [vmem:[#allocation2 + $0xa4] sm:$0xf] }
  0x8d   :  { %v296_v29 = vpack.c.bf16 %v264_v61, %v263_v25  ;;  %v297_v30 = vpack.c.bf16 %v266_v26, %v265_v3  ;;  %v243_v31 = vsel %vm79_vm15, %v1349_v54, 0.0  ;;  %v960_v32 = vld [vmem:[#allocation2 + $0xa8] sm:$0xf]  ;;  %vm65_vm1 = vcmp.ge.s32.totalorder %v1199_v19, 112 }
  0x8e   :  { %253 = vst [vmem:[#allocation2 + $0x70] sm:$0xff] %v249_v4  ;;  %v1097_v34 = vpop.permute.xlu1 %1096  ;;  %v1092_v35 = vpop.permute.xlu0 %1091  ;;  %v968_v36 = vld [vmem:[#allocation2 + $0xc0] sm:$0xf]  ;;  %v1026_v37 = vld [vmem:[#allocation2 + $0xc4] sm:$0xf]  ;;  %v953_v38 = vor.u32 %v1376_v14, %v952_v27  ;;  %v957_v39 = vor.u32 %v1022_v28, %v1378_v22  ;;  %v961_v40 = vor.u32 %v1380_v23, %v960_v32  ;;  %vm128_vm0 = vcmp.lt.s32.totalorder %v1181_v9, 112 }
  0x8f   :  { %254 = vst [vmem:[#allocation2 + $0x78] sm:$0xff] %v250_v6  ;;  %v1099_v41 = vunpack.i.h.bf16 %v1097_v34  ;;  %v1098_v44 = vunpack.i.l.bf16 %v1097_v34  ;;  %v1094_v45 = vunpack.i.h.bf16 %v1092_v35  ;;  %v1093_v46 = vunpack.i.l.bf16 %v1092_v35  ;;  %v976_v47 = vld [vmem:[#allocation2 + $0xc8] sm:$0xf]  ;;  %v1027_v48 = vld [vmem:[#allocation2 + $0xcc] sm:$0xf]  ;;  %v88_v42 = vpop.permute.xlu2 %87 }
  0x90   :  { %300 = vst [vmem:[#allocation2 + $0x80] sm:$0xff] %v296_v29  ;;  %v969_v49 = vor.u32 %v1028_v7, %v968_v36  ;;  %v973_v50 = vor.u32 %v1026_v37, %v970_v8  ;;  %v977_v52 = vor.u32 %v1029_v10, %v976_v47  ;;  %v981_v1 = vor.u32 %v1027_v48, %v978_v11  ;;  %v962_v10 = vld [vmem:[#allocation2 + $0xb8] sm:$0xf0] }
  0x91   :  { %301 = vst [vmem:[#allocation2 + $0x88] sm:$0xff] %v297_v30  ;;  %vm1606_vm10 = vcmp.lt.s32.totalorder %v1181_v9, 1  ;;  %v282_v57 = vsel %vm279_vm8, %v1094_v45, %v1088_v63  ;;  %vm1609_vm14 = vcmp.ge.s32.totalorder %v1197_v18, 1  ;;  %vm1610_vm4 = vcmp.ge.s32.totalorder %v1194_v17, 1 }
  0x92   :  { %v174_v5 = vsel %vm1606_vm10, %v1099_v41, %v1103_v21  ;;  %vm1607_vm12 = vmmov %vm1606_vm10  ;;  %vm1611_vm11 = vcmp.ge.s32.totalorder %v1202_v20, 1  ;;  %vm1612_vm5 = vcmp.ge.s32.totalorder %v1191_v16, 16  ;;  %683 = vmatpush.bf16.msra.mxu0 %v969_v49  ;;  %712 = vmatpush.bf16.msra.mxu1 %v973_v50  ;;  %v280_v7 = vsel %vm279_vm8, %v1089_v62, %v1093_v46 }
  0x93   :  { %v175_v55 = vsel %vm1607_vm12, %v1098_v44, %v1099_v41  ;;  %vm1608_vm13 = vmmov %vm1606_vm10  ;;  %v189_v59 = vsel %vm1609_vm14, %v174_v5, 0.0  ;;  %741 = vmatpush.bf16.msra.mxu2 %v977_v52  ;;  %770 = vmatpush.bf16.msra.mxu3 %v981_v1  ;;  %v283_v8 = vsel %vm279_vm8, %v1093_v46, %v1094_v45  ;;  %v1114_v62 = vunpack.i.h.bf16 %v1389_v33 }
  0x94   :  { %v176_v56 = vsel %vm1608_vm13, %v1104_v15, %v1098_v44  ;;  %v188_v21 = vsel %vm41_vm7, %v175_v55, 0.0  ;;  %vm1420_vm15 = vmand %vm1612_vm5, %vm1611_vm11  ;;  %v1023_v15 = vld [vmem:[#allocation2 + $0xac] sm:$0xf]  ;;  %v246_v2 = vsel %vm82_vm2, %v189_v59, 0.0  ;;  %v1113_v25 = vunpack.i.l.bf16 %v1389_v33 }
  0x95   :  { %v187_v0 = vsel %vm1610_vm4, %v176_v56, 0.0  ;;  %vm1615_vm10 = vmmov %vm1610_vm4  ;;  %v205_v61 = vpack.c.bf16 %v189_v59, %v188_v21  ;;  %v245_v4 = vsel %vm81_vm6, %v188_v21, 0.0  ;;  %v292_v11 = vsel %vm1420_vm15, %v283_v8, 0.0 }
  0x96   :  { %v293_v63 = vsel %vm1615_vm10, %v282_v57, 0.0  ;;  %v204_v60 = vpack.c.bf16 %v187_v0, %v1349_v54  ;;  %v244_v3 = vsel %vm80_vm9, %v187_v0, 0.0  ;;  %v248_v54 = vpack.c.bf16 %v246_v2, %v245_v4  ;;  %vm1616_vm2 = vmmov %vm1609_vm14  ;;  %684 = vmatpush.bf16.msra.mxu0 %v953_v38  ;;  %713 = vmatpush.bf16.msra.mxu1 %v957_v39  ;;  %v127_v26 = vpop.permute.xlu1 %126  ;;  %v1107_v27 = vpop.permute.xlu0 %1106  ;;  %v1016_v4 = vld [vmem:[#allocation2 + $0x6c] sm:$0xf0] }
  0x97   :  { %v247_v6 = vpack.c.bf16 %v244_v3, %v243_v31  ;;  %v295_v14 = vsel %vm1616_vm2, %v280_v7, 0.0  ;;  %v965_v22 = vor.u32 %v1023_v15, %v962_v10  ;;  %209 = vst [vmem:[#allocation2 + $0x58] sm:$0xff] %v205_v61  ;;  %v298_v23 = vpack.c.bf16 %v293_v63, %v292_v11  ;;  %742 = vmatpush.bf16.msra.mxu2 %v961_v40  ;;  %v936_v47 = vld [vmem:[#allocation2 + $0x80] sm:$0xf]  ;;  %v1018_v48 = vld [vmem:[#allocation2 + $0x84] sm:$0xf] }
  0x98   :  { %208 = vst [vmem:[#allocation2 + $0x50] sm:$0xff] %v204_v60  ;;  %v299_v51 = vpack.c.bf16 %v295_v14, %v294_v53  ;;  %v1109_v28 = vunpack.i.h.bf16 %v1107_v27  ;;  %v1108_v29 = vunpack.i.l.bf16 %v1107_v27  ;;  %vm95_vm7 = vcmp.lt.s32.totalorder %v1181_v9, 16  ;;  %v944_v55 = vld [vmem:[#allocation2 + $0x88] sm:$0xf]  ;;  %v1019_v15 = vld [vmem:[#allocation2 + $0x8c] sm:$0xf] }
  0x99   :  { %251 = vst [vmem:[#allocation2 + $0x60] sm:$0xff] %v247_v6  ;;  %771 = vmatpush.bf16.msra.mxu3 %v965_v22  ;;  %vm1127_vm9 = vmmov 1   ;;  %vm63_vm6 = vcmp.ge.s32.totalorder %v1191_v16, 112  ;;  %vm1617_vm12 = vcmp.lt.s32.totalorder %v1187_v13, 240  ;;  %v97_v32 = vsel %vm95_vm7, %v1113_v25, %v1114_v62  ;;  %v922_v7 = vld [vmem:[#allocation2 + $0x70] sm:$0xf0] }
  0x9a   :  { %vm77_vm8 = vmxor %vm65_vm1, %vm1127_vm9  ;;  %252 = vst [vmem:[#allocation2 + $0x68] sm:$0xff] %v248_v54  ;;  %v129_v43 = vsel %vm128_vm0, %v1109_v28, %v127_v26  ;;  %v132_v53 = vsel %vm128_vm0, %v127_v26, %v1108_v29  ;;  %v98_v34 = vsel %vm95_vm7, %v88_v42, %v1113_v25  ;;  %vm54_vm13 = vcmp.lt.s32.totalorder %v1187_v13, 144  ;;  %v1017_v54 = vld [vmem:[#allocation2 + $0x74] sm:$0xf0]  ;;  %v930_v11 = vld [vmem:[#allocation2 + $0x78] sm:$0xf0] }
  0x9b   :  { %302 = vst [vmem:[#allocation2 + $0x90] sm:$0xff] %v298_v23  ;;  %v144_v30 = vsel %vm1617_vm12, %v132_v53, 0.0  ;;  %v200_v31 = vsel %vm77_vm8, %v129_v43, 0.0  ;;  %vm1464_vm1 = vmxor %vm52_vm3, %vm1127_vm9  ;;  %vm1622_vm4 = vcmp.ge.s32.totalorder %v1199_v19, 16  ;;  %vm1625_vm5 = vcmp.lt.s32.totalorder %v1185_v12, 240 }
  0x9c   :  { %303 = vst [vmem:[#allocation2 + $0x98] sm:$0xff] %v299_v51  ;;  %v160_v35 = vpack.c.bf16 %v144_v30, %v129_v43  ;;  %v203_v36 = vpack.c.bf16 %v144_v30, %v200_v31  ;;  %vm1472_vm14 = vmxor %vm63_vm6, %vm1127_vm9  ;;  %v110_v38 = vsel %vm1622_vm4, %v97_v32, 0.0  ;;  %v154_v39 = vsel %vm1464_vm1, %v98_v34, 0.0  ;;  %v451_v30 = vld [vmem:[%s1582_s2 + $0x8] sm:$0xff] }
  0x9d   :  { %vm1481_vm11 = vmxor %vm54_vm13, %vm1127_vm9  ;;  %vm1626_vm15 = vcmp.ge.s32.totalorder %v1191_v16, 16  ;;  %v1128_v53 = vmov 0   ;;  %vm800_vm10 = vcmp.lt.s32.totalorder %v1209_v24, 8  ;;  %vm799_vm2 = vcmp.lt.s32.totalorder %v1194_v17, 8 }
  0x9e   :  { %164 = vst [vmem:[#allocation2 + $0x38] sm:$0xff] %v160_v35  ;;  %v123_v40 = vpop.permute.xlu1 %122  ;;  %v94_v13 = vpop.permute.xlu0 %93  ;;  %v1013_v26 = vld [vmem:[#allocation2 + $0x54] sm:$0xf0]  ;;  %v914_v27 = vld [vmem:[#allocation2 + $0x58] sm:$0xf0]  ;;  %1115 = vset.pattern.permute.xlu0 %v1128_v53  ;;  %1116 = vset.pattern.permute.xlu1 %v1128_v53 }
  0x9f   :  { %207 = vst [vmem:[#allocation2 + $0x48] sm:$0xff] %v203_v36  ;;  %v130_v44 = vsel %vm128_vm0, %v123_v40, %v1109_v28  ;;  %v131_v45 = vsel %vm128_vm0, %v1108_v29, %v123_v40  ;;  %v96_v19 = vsel %vm95_vm7, %v1114_v62, %v94_v13  ;;  %v99_v46 = vsel %vm95_vm7, %v94_v13, %v88_v42  ;;  %v450_v42 = vld [vmem:[%s1582_s2] sm:$0xff]  ;;  %v1012_v43 = vld [vmem:[#allocation2 + $0x4c] sm:$0xf0]  ;;  %v906_v33 = vld [vmem:[#allocation2 + $0x50] sm:$0xf0] }
  0xa0   :  { %v142_v49 = vsel %vm1625_vm5, %v130_v44, 0.0  ;;  %v198_v50 = vsel %vm1472_vm14, %v131_v45, 0.0  ;;  %v108_v52 = vsel %vm1626_vm15, %v99_v46, 0.0  ;;  %v115_v1 = vpack.c.bf16 %v96_v19, %v110_v38  ;;  %v920_v3 = vld [vmem:[#allocation2 + $0x60] sm:$0xf]  ;;  %460 = vperm.xlu0 %1115, %v450_v42   ;;  %465 = vperm.xlu1 %1116, %v451_v30  }
  0xa1   :  { %v159_v56 = vpack.c.bf16 %v142_v49, %v131_v45  ;;  %v202_v57 = vpack.c.bf16 %v142_v49, %v198_v50  ;;  %v114_v59 = vpack.c.bf16 %v98_v34, %v108_v52  ;;  %v156_v9 = vsel %vm1481_vm11, %v96_v19, 0.0  ;;  %v1014_v6 = vld [vmem:[#allocation2 + $0x64] sm:$0xf]  ;;  %v928_v8 = vld [vmem:[#allocation2 + $0x68] sm:$0xf]  ;;  %1117 = vset.pattern.permute.xlu2 %v1128_v53 }
  0xa2   :  { %v1020_v5 = vld [vmem:[#allocation2 + $0x8c] sm:$0xf0]  ;;  %v938_v0 = vld [vmem:[#allocation2 + $0x90] sm:$0xf0]  ;;  %119 = vst [vmem:[#allocation2 + $0x18] sm:$0xff] %v115_v1  ;;  %v157_v12 = vpack.c.bf16 %v154_v39, %v108_v52  ;;  %v158_v16 = vpack.c.bf16 %v156_v9, %v110_v38  ;;  %v921_v14 = vor.u32 %v1016_v4, %v920_v3  ;;  %v925_v22 = vor.u32 %v1014_v6, %v922_v7  ;;  %v998_v9 = vld [vmem:[%s1583_s1] sm:$0xff] }
  0xa3   :  { %v1021_v21 = vld [vmem:[#allocation2 + $0x94] sm:$0xf0]  ;;  %v937_v58 = vor.u32 %v1020_v5, %v936_v47  ;;  %v941_v63 = vor.u32 %v1018_v48, %v938_v0  ;;  %v946_v2 = vld [vmem:[#allocation2 + $0x98] sm:$0xf0]  ;;  %163 = vst [vmem:[#allocation2 + $0x30] sm:$0xff] %v159_v56  ;;  %v929_v62 = vor.u32 %v1017_v54, %v928_v8  ;;  %vm798_vm0 = vcmp.lt.s32.totalorder %v1202_v20, 8 }
  0xa4   :  { %v945_v60 = vor.u32 %v1021_v21, %v944_v55  ;;  %v949_v61 = vor.u32 %v1019_v15, %v946_v2  ;;  %206 = vst [vmem:[#allocation2 + $0x40] sm:$0xff] %v202_v57  ;;  %v1015_v10 = vld [vmem:[#allocation2 + $0x6c] sm:$0xf]  ;;  %v880_v46 = vld [vmem:[#allocation2 + $0x8] sm:$0xf]  ;;  %v456_v2 = vld [vmem:[%s1582_s2 + $0x30] sm:$0xff] }
  0xa5   :  { %685 = vmatpush.bf16.msra.mxu0 %v937_v58  ;;  %714 = vmatpush.bf16.msra.mxu1 %v941_v63  ;;  %118 = vst [vmem:[#allocation2 + $0x10] sm:$0xff] %v114_v59  ;;  %v933_v25 = vor.u32 %v1015_v10, %v930_v11  ;;  %v1009_v36 = vld [vmem:[#allocation2 + $0x34] sm:$0xf0]  ;;  %v898_v44 = vld [vmem:[#allocation2 + $0x38] sm:$0xf0]  ;;  %v999_v58 = vld [vmem:[%s1583_s1 + $0x8] sm:$0xff] }
  0xa6   :  { %743 = vmatpush.bf16.msra.mxu2 %v945_v60  ;;  %772 = vmatpush.bf16.msra.mxu3 %v949_v61  ;;  %161 = vst [vmem:[#allocation2 + $0x20] sm:$0xff] %v157_v12  ;;  %v912_v23 = vld [vmem:[#allocation2 + $0x48] sm:$0xf]  ;;  %v1011_v51 = vld [vmem:[#allocation2 + $0x4c] sm:$0xf]  ;;  %v453_v12 = vld [vmem:[%s1582_s2 + $0x18] sm:$0xff] }
  0xa7   :  { %162 = vst [vmem:[#allocation2 + $0x28] sm:$0xff] %v158_v16  ;;  %v913_v28 = vor.u32 %v1013_v26, %v912_v23  ;;  %v917_v29 = vor.u32 %v1011_v51, %v914_v27  ;;  %v1003_v47 = vld [vmem:[#allocation2 + $0xc] sm:$0xf]  ;;  %v872_v1 = vld [vmem:[#allocation2] sm:$0xf]  ;;  %v452_v63 = vld [vmem:[%s1582_s2 + $0x10] sm:$0xff] }
  0xa8   :  { %v1002_v55 = vld [vmem:[#allocation2 + $0x4] sm:$0xf]  ;;  %475 = vperm.xlu1 %1116, %v453_v12   ;;  %v455_v15 = vld [vmem:[%s1582_s2 + $0x28] sm:$0xff]  ;;  %470 = vperm.xlu2 %1117, %v452_v63   ;;  %v1000_v60 = vld [vmem:[%s1583_s1 + $0x10] sm:$0xff]  ;;  %vm801_vm7 = vcmp.lt.s32.totalorder %v1197_v18, 8 }
  0xa9   :  { %686 = vmatpush.bf16.msra.mxu0 %v921_v14  ;;  %715 = vmatpush.bf16.msra.mxu1 %v925_v22  ;;  %v1005_v50 = vld [vmem:[#allocation2 + $0x14] sm:$0xf0]  ;;  %v882_v52 = vld [vmem:[#allocation2 + $0x18] sm:$0xf0]  ;;  %v454_v16 = vld [vmem:[%s1582_s2 + $0x20] sm:$0xff] }
  0xaa   :  { %744 = vmatpush.bf16.msra.mxu2 %v929_v62  ;;  %773 = vmatpush.bf16.msra.mxu3 %v933_v25  ;;  %v1008_v37 = vld [vmem:[#allocation2 + $0x2c] sm:$0xf0]  ;;  %v890_v40 = vld [vmem:[#allocation2 + $0x30] sm:$0xf0]  ;;  %v881_v57 = vor.u32 %v1005_v50, %v880_v46  ;;  %v885_v59 = vor.u32 %v1003_v47, %v882_v52  ;;  %v457_v61 = vld [vmem:[%s1582_s2 + $0x38] sm:$0xff] }
  0xab   :  { %v904_v31 = vld [vmem:[#allocation2 + $0x40] sm:$0xf]  ;;  %v1010_v32 = vld [vmem:[#allocation2 + $0x44] sm:$0xf]  ;;  %485 = vperm.xlu0 %1115, %v455_v15   ;;  %v1001_v3 = vld [vmem:[%s1583_s1 + $0x18] sm:$0xff] }
  0xac   :  { %v905_v34 = vor.u32 %v1012_v43, %v904_v31  ;;  %v909_v35 = vor.u32 %v1010_v32, %v906_v33  ;;  %v1004_v5 = vld [vmem:[#allocation2 + $0xc] sm:$0xf0]  ;;  %v874_v56 = vld [vmem:[#allocation2 + $0x10] sm:$0xf0] }
  0xad   :  { %v888_v38 = vld [vmem:[#allocation2 + $0x20] sm:$0xf]  ;;  %v1006_v39 = vld [vmem:[#allocation2 + $0x24] sm:$0xf]  ;;  %v873_v0 = vor.u32 %v1004_v5, %v872_v1  ;;  %v877_v21 = vor.u32 %v1002_v55, %v874_v56 }
  0xae   :  { %745 = vmatpush.bf16.msra.mxu2 %v913_v28  ;;  %774 = vmatpush.bf16.msra.mxu3 %v917_v29  ;;  %v896_v41 = vld [vmem:[#allocation2 + $0x28] sm:$0xf]  ;;  %v1007_v13 = vld [vmem:[#allocation2 + $0x2c] sm:$0xf]  ;;  %v889_v48 = vor.u32 %v1008_v37, %v888_v38  ;;  %v893_v49 = vor.u32 %v1006_v39, %v890_v40 }
  0xaf   :  { %687 = vmatpush.bf16.msra.mxu0 %v905_v34  ;;  %716 = vmatpush.bf16.msra.mxu1 %v909_v35  ;;  %v897_v45 = vor.u32 %v1009_v36, %v896_v41  ;;  %v901_v19 = vor.u32 %v1007_v13, %v898_v44 }
  0xb0   :  { %490 = vperm.xlu1 %1116, %v456_v2   ;;  %480 = vperm.xlu2 %1117, %v454_v16  }
  0xb2   :  { %746 = vmatpush.bf16.msra.mxu2 %v897_v45  ;;  %775 = vmatpush.bf16.msra.mxu3 %v901_v19 }
  0xb3   :  { %688 = vmatpush.bf16.msra.mxu0 %v889_v48  ;;  %717 = vmatpush.bf16.msra.mxu1 %v893_v49 }
  0xb6   :  { %747 = vmatpush.bf16.msra.mxu2 %v881_v57  ;;  %776 = vmatpush.bf16.msra.mxu3 %v885_v59 }
  0xb7   :  { %689 = vmatpush.bf16.msra.mxu0 %v873_v0  ;;  %718 = vmatpush.bf16.msra.mxu1 %v877_v21 }
  0xb8   :  { %495 = vperm.xlu2 %1117, %v457_v61  }
  0xb9   :  { %748 = vmatmul.bf16.vlgmr.msra.gmra.mxu2 %v998_v9  ;;  %777 = vmatmul.bf16.vlgmr.msra.gmra.mxu3 %v998_v9 }
  0xba   :  { %690 = vmatmul.bf16.vlgmr.msra.gmra.mxu0 %v998_v9  ;;  %719 = vmatmul.bf16.vlgmr.msra.gmra.mxu1 %v998_v9 }
  0xc9   :  { %753 = vmatmul.bf16.gmra.mxu2 %v999_v58  ;;  %782 = vmatmul.bf16.gmra.mxu3 %v999_v58 }
  0xca   :  { %695 = vmatmul.bf16.gmra.mxu0 %v999_v58  ;;  %724 = vmatmul.bf16.gmra.mxu1 %v999_v58 }
  0xd9   :  { %758 = vmatmul.bf16.gmra.mxu2 %v1000_v60  ;;  %787 = vmatmul.bf16.gmra.mxu3 %v1000_v60 }
  0xda   :  { %700 = vmatmul.bf16.gmra.mxu0 %v1000_v60  ;;  %729 = vmatmul.bf16.gmra.mxu1 %v1000_v60 }
  0xe9   :  { %763 = vmatmul.bf16.gmra.mxu2 %v1001_v3  ;;  %792 = vmatmul.bf16.gmra.mxu3 %v1001_v3 }
  0xea   :  { %705 = vmatmul.bf16.gmra.mxu0 %v1001_v3  ;;  %734 = vmatmul.bf16.gmra.mxu1 %v1001_v3 }
 0x102   :  { %v471_v51 = vpop.permute.xlu2 %470 }
 0x10a   :  { %v481_v47 = vpop.permute.xlu2 %480 }
 0x112   :  { %v461_v11 = vpop.permute.xlu0 %460  ;;  %v466_v23 = vpop.permute.xlu1 %465 }
 0x113   :  { %v496_v21 = vpop.permute.xlu2 %495 }
 0x11a   :  { %v476_v30 = vpop.permute.xlu1 %475 }
 0x11d   :  { %v486_v9 = vpop.permute.xlu0 %485 }
 0x122   :  { %v491_v50 = vpop.permute.xlu1 %490 }
 0x137   :  { %v691_v4 = vpop.f32.mrf.mxu0  ;;  %v720_v6 = vpop.f32.mrf.mxu1 }
 0x138   :  { %v692_v26 = vadd.f32 %v691_v4, %v461_v11 }
 0x13c   :  { %v749_v7 = vpop.f32.mrf.mxu2  ;;  %v778_v8 = vpop.f32.mrf.mxu3 }
 0x13d   :  { %v750_v43 = vadd.f32 %v749_v7, %v461_v11 }
 0x13f   :  { %v693_v10 = vpop.f32.mrf.mxu0  ;;  %v722_v54 = vpop.f32.mrf.mxu1 }
 0x140   :  { %v694_v34 = vadd.f32 %v693_v10, %v466_v23 }
 0x144   :  { %v751_v14 = vpop.f32.mrf.mxu2  ;;  %v780_v22 = vpop.f32.mrf.mxu3 }
 0x145   :  { %v752_v39 = vadd.f32 %v751_v14, %v466_v23 }
 0x147   :  { %v696_v62 = vpop.f32.mrf.mxu0  ;;  %v725_v25 = vpop.f32.mrf.mxu1 }
 0x148   :  { %v697_v27 = vadd.f32 %v696_v62, %v471_v51 }
 0x14a   :  { %v810_v28 = vsel %vm798_vm0, %v692_v26, %v697_v27 }
 0x14b   :  { %842 = vst [vmem:[%s1584_s3] sm:$0xff] %v810_v28 }
 0x14c   :  { %v754_v29 = vpop.f32.mrf.mxu2  ;;  %v783_v42 = vpop.f32.mrf.mxu3 }
 0x14d   :  { %v755_v53 = vadd.f32 %v754_v29, %v471_v51 }
 0x14f   :  { %v812_v31 = vsel %vm800_vm10, %v750_v43, %v755_v53  ;;  %v698_v32 = vpop.f32.mrf.mxu0  ;;  %v727_v33 = vpop.f32.mrf.mxu1 }
 0x150   :  { %844 = vst [vmem:[%s1584_s3 + $0x10] sm:$0xff] %v812_v31  ;;  %v699_v35 = vadd.f32 %v698_v32, %v476_v30 }
 0x152   :  { %v814_v36 = vsel %vm798_vm0, %v694_v34, %v699_v35 }
 0x153   :  { %846 = vst [vmem:[%s1584_s3 + $0x20] sm:$0xff] %v814_v36 }
 0x154   :  { %v756_v37 = vpop.f32.mrf.mxu2  ;;  %v785_v38 = vpop.f32.mrf.mxu3 }
 0x155   :  { %v757_v40 = vadd.f32 %v756_v37, %v476_v30 }
 0x157   :  { %v816_v41 = vsel %vm800_vm10, %v752_v39, %v757_v40  ;;  %v701_v13 = vpop.f32.mrf.mxu0  ;;  %v730_v44 = vpop.f32.mrf.mxu1 }
 0x158   :  { %848 = vst [vmem:[%s1584_s3 + $0x30] sm:$0xff] %v816_v41  ;;  %v731_v24 = vadd.f32 %v730_v44, %v481_v47 }
 0x15c   :  { %v759_v45 = vpop.f32.mrf.mxu2  ;;  %v788_v20 = vpop.f32.mrf.mxu3 }
 0x15d   :  { %v789_v59 = vadd.f32 %v788_v20, %v481_v47 }
 0x15f   :  { %v703_v19 = vpop.f32.mrf.mxu0  ;;  %v732_v46 = vpop.f32.mrf.mxu1 }
 0x160   :  { %v733_v15 = vadd.f32 %v732_v46, %v486_v9 }
 0x164   :  { %v761_v48 = vpop.f32.mrf.mxu2  ;;  %v790_v49 = vpop.f32.mrf.mxu3 }
 0x165   :  { %v791_v3 = vadd.f32 %v790_v49, %v486_v9 }
 0x167   :  { %v706_v52 = vpop.f32.mrf.mxu0  ;;  %v735_v1 = vpop.f32.mrf.mxu1 }
 0x168   :  { %v736_v5 = vadd.f32 %v735_v1, %v491_v50 }
 0x16a   :  { %v819_v55 = vsel %vm799_vm2, %v731_v24, %v736_v5 }
 0x16b   :  { %843 = vst [vmem:[%s1584_s3 + $0x8] sm:$0xff] %v819_v55 }
 0x16c   :  { %v764_v56 = vpop.f32.mrf.mxu2  ;;  %v793_v57 = vpop.f32.mrf.mxu3 }
 0x16d   :  { %v794_v0 = vadd.f32 %v793_v57, %v491_v50 }
 0x16f   :  { %v821_v12 = vsel %vm801_vm7, %v789_v59, %v794_v0  ;;  %v708_v58 = vpop.f32.mrf.mxu0  ;;  %v737_v63 = vpop.f32.mrf.mxu1 }
 0x170   :  { %845 = vst [vmem:[%s1584_s3 + $0x18] sm:$0xff] %v821_v12  ;;  %v738_v2 = vadd.f32 %v737_v63, %v496_v21 }
 0x172   :  { %v823_v16 = vsel %vm799_vm2, %v733_v15, %v738_v2 }
 0x173   :  { %847 = vst [vmem:[%s1584_s3 + $0x28] sm:$0xff] %v823_v16 }
 0x174   :  { %v766_v60 = vpop.f32.mrf.mxu2  ;;  %v795_v61 = vpop.f32.mrf.mxu3 }
 0x175   :  { %v796_v4 = vadd.f32 %v795_v61, %v496_v21 }
 0x177   :  { %v825_v6 = vsel %vm801_vm7, %v791_v3, %v796_v4 }
 0x178   :  { %849 = vst [vmem:[%s1584_s3 + $0x38] sm:$0xff] %v825_v6 }

</bundles_post_ra>
